<compile_context>
chip_gen: v7x
topology: tpu7x:2x2x1
jax: 0.10.0
libtpu: 0.0.40
codegen_flags: <defaults>
</compile_context>

<pallas_src>
import functools

import jax
import jax.numpy as jnp
from jax.experimental import pallas as pl
from jax.experimental.pallas import tpu as pltpu

D_IN = 128
D_HID = 256
D_OUT = 128


def fl_model_kernel(x_ref, w1_ref, b1_ref, w2_ref, b2_ref, o_ref):
    # layer1: x @ W1 (bf16 inputs, f32 accumulate on the MXU)
    h = jnp.dot(x_ref[...], w1_ref[...], preferred_element_type=jnp.float32)
    # bias + ReLU in f32 on the VPU (free filler under an MXU-bound loop)
    h = jnp.maximum(h + b1_ref[...], 0.0)
    # Dropout(p=0.2): identity in inference/eval mode.
    # TODO(synk): training-mode dropout would need pltpu.prng_seed /
    #             pltpu.prng_random_bits masking with per-tile seeds.
    # layer2: h @ W2 (cast hidden back to bf16 to keep the MXU in bf16)
    out = jnp.dot(h.astype(w2_ref.dtype), w2_ref[...],
                  preferred_element_type=jnp.float32)
    o_ref[...] = (out + b2_ref[...]).astype(o_ref.dtype)


def fl_model_forward(x, w1, b1, w2, b2, *, tile_b=1024):
    """Forward pass of FLModel. x: [B, 128] f32. Returns [B, 128] f32."""
    B = x.shape[0]

    # Pick a batch tile: multiple of 8 sublanes, no larger than needed.
    # 1024 rows keeps per-step pipeline buffers tiny (< 2 MiB double-buffered)
    # and is safe on v5e's 16 MiB scoped VMEM and v7x's 64 MiB VMEM.
    tile_b = min(tile_b, max(B, 8))
    tile_b = ((tile_b + 7) // 8) * 8

    # Pad the batch to a multiple of the tile (padded rows are sliced off).
    num_tiles = pl.cdiv(B, tile_b)
    b_pad = num_tiles * tile_b
    if b_pad != B:
        x = jnp.pad(x, ((0, b_pad - B), (0, 0)))

    # bf16 inputs for the MXU; biases stay f32.
    x_bf16 = x.astype(jnp.bfloat16)
    w1_bf16 = w1.astype(jnp.bfloat16)
    w2_bf16 = w2.astype(jnp.bfloat16)
    b1_f32 = b1.astype(jnp.float32)
    b2_f32 = b2.astype(jnp.float32)

    flops = 2 * b_pad * D_IN * D_HID + 2 * b_pad * D_HID * D_OUT
    bytes_accessed = (
        b_pad * D_IN * 2            # x (bf16)
        + b_pad * D_OUT * 4         # out (f32)
        + (D_IN * D_HID + D_HID * D_OUT) * 2   # weights (bf16)
        + (D_HID + D_OUT) * 4       # biases (f32)
    )

    out = pl.pallas_call(
        fl_model_kernel,
        out_shape=jax.ShapeDtypeStruct((b_pad, D_OUT), jnp.float32),
        grid_spec=pltpu.PrefetchScalarGridSpec(
            num_scalar_prefetch=0,
            grid=(num_tiles,),
            in_specs=[
                pl.BlockSpec((tile_b, D_IN), lambda i: (i, 0)),   # x: tiled on batch
                pl.BlockSpec((D_IN, D_HID), lambda i: (0, 0)),    # W1: resident
                pl.BlockSpec((1, D_HID), lambda i: (0, 0)),       # b1: resident
                pl.BlockSpec((D_HID, D_OUT), lambda i: (0, 0)),   # W2: resident
                pl.BlockSpec((1, D_OUT), lambda i: (0, 0)),       # b2: resident
            ],
            out_specs=pl.BlockSpec((tile_b, D_OUT), lambda i: (i, 0)),
        ),
        compiler_params=pltpu.CompilerParams(
            dimension_semantics=("parallel",)),   # megacore sharding on v7x
        cost_estimate=pl.CostEstimate(
            flops=flops, transcendentals=0, bytes_accessed=bytes_accessed),
    )(x_bf16, w1_bf16, b1_f32, w2_bf16, b2_f32)

    return out[:B]


def init_params(key):
    """Deterministic init mimicking nn.Linear default: U(-1/sqrt(fan_in), 1/sqrt(fan_in))."""
    k1, k2, k3, k4 = jax.random.split(key, 4)
    bound1 = 1.0 / jnp.sqrt(jnp.float32(D_IN))
    bound2 = 1.0 / jnp.sqrt(jnp.float32(D_HID))
    # stored as [in, out] (transposed relative to PyTorch's [out, in])
    w1 = jax.random.uniform(k1, (D_IN, D_HID), jnp.float32, -bound1, bound1)
    b1 = jax.random.uniform(k2, (1, D_HID), jnp.float32, -bound1, bound1)
    w2 = jax.random.uniform(k3, (D_HID, D_OUT), jnp.float32, -bound2, bound2)
    b2 = jax.random.uniform(k4, (1, D_OUT), jnp.float32, -bound2, bound2)
    return w1, b1, w2, b2


if __name__ == "__main__":
    key = jax.random.PRNGKey(0)
    kx, kp = jax.random.split(key)

    # Small, non-tile-aligned batch to exercise tiling + pad/slice path.
    B = 300
    TILE_B = 128
    x = jax.random.normal(kx, (B, D_IN), jnp.float32)
    w1, b1, w2, b2 = init_params(kp)

    fwd = jax.jit(functools.partial(fl_model_forward, tile_b=TILE_B))
    out = jax.block_until_ready(fwd(x, w1, b1, w2, b2))
    assert out.shape == (B, D_OUT)

    # Reference that mirrors the kernel's numerics: bf16-rounded operands,
    # f32 accumulation, f32 bias/ReLU.
    xb = x.astype(jnp.bfloat16).astype(jnp.float32)
    w1b = w1.astype(jnp.bfloat16).astype(jnp.float32)
    w2b = w2.astype(jnp.bfloat16).astype(jnp.float32)
    h_ref = jnp.maximum(xb @ w1b + b1, 0.0)
    ref = h_ref.astype(jnp.bfloat16).astype(jnp.float32) @ w2b + b2
    assert jnp.allclose(out, ref, atol=5e-3, rtol=5e-3), (
        float(jnp.max(jnp.abs(out - ref))))

    # Sanity check vs the full-f32 math of the original module (loose tol for bf16).
    ref_f32 = jnp.maximum(x @ w1 + b1, 0.0) @ w2 + b2
    assert jnp.allclose(out, ref_f32, atol=5e-2, rtol=5e-2)

    print("KERNEL_OK")
</pallas_src>

<mosaic_0001>
module attributes {stable_mosaic.version = 11 : i64} {
  func.func @fl_model_kernel(%arg0: i32, %arg1: memref<128x128xbf16, #tpu.memory_space<vmem>>, %arg2: memref<128x256xbf16, #tpu.memory_space<vmem>>, %arg3: memref<1x256xf32, #tpu.memory_space<vmem>>, %arg4: memref<256x128xbf16, #tpu.memory_space<vmem>>, %arg5: memref<1x128xf32, #tpu.memory_space<vmem>>, %arg6: memref<128x128xf32, #tpu.memory_space<vmem>>) attributes {dimension_semantics = [#tpu.dimension_semantics<parallel>], iteration_bounds = array<i64: 3>, scalar_prefetch = 0 : i64, scratch_operands = 0 : i64, tpu.core_type = #tpu.core_type<tc>, window_params = [{transform_indices = @transform_0, window_bounds = array<i64: 128, 128>}, {pipeline_mode = #tpu.pipeline_mode<synchronous>, transform_indices = @transform_1, window_bounds = array<i64: 128, 256>}, {pipeline_mode = #tpu.pipeline_mode<synchronous>, transform_indices = @transform_2, window_bounds = array<i64: 1, 256>}, {pipeline_mode = #tpu.pipeline_mode<synchronous>, transform_indices = @transform_3, window_bounds = array<i64: 256, 128>}, {pipeline_mode = #tpu.pipeline_mode<synchronous>, transform_indices = @transform_4, window_bounds = array<i64: 1, 128>}, {transform_indices = @transform_5, window_bounds = array<i64: 128, 128>}]} {
    %c0 = arith.constant 0 : index
    %c0_0 = arith.constant 0 : index
    %0 = vector.load %arg1[%c0, %c0_0] : memref<128x128xbf16, #tpu.memory_space<vmem>>, vector<128x128xbf16>
    %c0_1 = arith.constant 0 : index
    %c0_2 = arith.constant 0 : index
    %1 = vector.load %arg2[%c0_1, %c0_2] : memref<128x256xbf16, #tpu.memory_space<vmem>>, vector<128x256xbf16>
    %cst = arith.constant dense<0.000000e+00> : vector<128x256xf32>
    %2 = tpu.matmul %0, %1, %cst {dimension_numbers = #tpu.dot_dimension_numbers<[1], [0], [0], [1], [0, 0, 1, 1], [], []>} : vector<128x128xbf16>, vector<128x256xbf16>, vector<128x256xf32> -> vector<128x256xf32>
    %c0_3 = arith.constant 0 : index
    %c0_4 = arith.constant 0 : index
    %3 = vector.load %arg3[%c0_3, %c0_4] : memref<1x256xf32, #tpu.memory_space<vmem>>, vector<1x256xf32>
    %4 = vector.broadcast %3 : vector<1x256xf32> to vector<128x256xf32>
    %5 = arith.addf %2, %4 : vector<128x256xf32>
    %cst_5 = arith.constant 0.000000e+00 : f32
    %6 = vector.broadcast %cst_5 : f32 to vector<128x256xf32>
    %7 = arith.maximumf %5, %6 : vector<128x256xf32>
    %8 = arith.truncf %7 : vector<128x256xf32> to vector<128x256xbf16>
    %c0_6 = arith.constant 0 : index
    %c0_7 = arith.constant 0 : index
    %9 = vector.load %arg4[%c0_6, %c0_7] : memref<256x128xbf16, #tpu.memory_space<vmem>>, vector<256x128xbf16>
    %cst_8 = arith.constant dense<0.000000e+00> : vector<128x128xf32>
    %10 = tpu.matmul %8, %9, %cst_8 {dimension_numbers = #tpu.dot_dimension_numbers<[1], [0], [0], [1], [0, 0, 1, 1], [], []>} : vector<128x256xbf16>, vector<256x128xbf16>, vector<128x128xf32> -> vector<128x128xf32>
    %c0_9 = arith.constant 0 : index
    %c0_10 = arith.constant 0 : index
    %11 = vector.load %arg5[%c0_9, %c0_10] : memref<1x128xf32, #tpu.memory_space<vmem>>, vector<1x128xf32>
    %12 = vector.broadcast %11 : vector<1x128xf32> to vector<128x128xf32>
    %13 = arith.addf %10, %12 : vector<128x128xf32>
    %c0_11 = arith.constant 0 : index
    %c0_12 = arith.constant 0 : index
    %14 = vector.load %arg6[%c0_11, %c0_12] : memref<128x128xf32, #tpu.memory_space<vmem>>, vector<128x128xf32>
    tpu.vector_store %arg6[%c0_11, %c0_12], %13 {strides = array<i32>} : memref<128x128xf32, #tpu.memory_space<vmem>>, vector<128x128xf32>,
    return
  }
  func.func @transform_0(%arg0: i32) -> (i32, i32) {
    %c0_i32 = arith.constant 0 : i32
    %c0_i32_0 = arith.constant 0 : i32
    return %arg0, %c0_i32 : i32, i32
  }
  func.func @transform_1(%arg0: i32) -> (i32, i32) {
    %c0_i32 = arith.constant 0 : i32
    %c0_i32_0 = arith.constant 0 : i32
    %c0_i32_1 = arith.constant 0 : i32
    return %c0_i32, %c0_i32_0 : i32, i32
  }
  func.func @transform_2(%arg0: i32) -> (i32, i32) {
    %c0_i32 = arith.constant 0 : i32
    %c0_i32_0 = arith.constant 0 : i32
    %c0_i32_1 = arith.constant 0 : i32
    return %c0_i32, %c0_i32_0 : i32, i32
  }
  func.func @transform_3(%arg0: i32) -> (i32, i32) {
    %c0_i32 = arith.constant 0 : i32
    %c0_i32_0 = arith.constant 0 : i32
    %c0_i32_1 = arith.constant 0 : i32
    return %c0_i32, %c0_i32_0 : i32, i32
  }
  func.func @transform_4(%arg0: i32) -> (i32, i32) {
    %c0_i32 = arith.constant 0 : i32
    %c0_i32_0 = arith.constant 0 : i32
    %c0_i32_1 = arith.constant 0 : i32
    return %c0_i32, %c0_i32_0 : i32, i32
  }
  func.func @transform_5(%arg0: i32) -> (i32, i32) {
    %c0_i32 = arith.constant 0 : i32
    %c0_i32_0 = arith.constant 0 : i32
    return %arg0, %c0_i32 : i32, i32
  }
}

</mosaic_0001>

<bundles_post_ra>
// kernel: fl_model_forward.1
= control target key start
LH: loop header
LB: loop body
LE: loop exit
PB: predicated region body
PF: predicated region fallthrough
CT: control target
= control target key end

     0   :  { %s1078_s18 = smov 0   ;;  %s1291_s0 = inlined_call_operand.vmem [shape: bf16[384,128], index: 0, kind: input, shape index: {}]   ;;  %s1292_s1 = inlined_call_operand.vmem [shape: bf16[128,256], index: 1, kind: input, shape index: {}]   ;;  %s1293_s2 = inlined_call_operand.vmem [shape: f32[1,256], index: 2, kind: input, shape index: {}]   ;;  %s1294_s3 = inlined_call_operand.vmem [shape: bf16[256,128], index: 3, kind: input, shape index: {}]   ;;  %s1295_s4 = inlined_call_operand.vmem [shape: f32[1,128], index: 4, kind: input, shape index: {}]   ;;  %s1296_s5 = inlined_call_operand.vmem [shape: f32[384,128], index: 5, kind: output, shape index: {}]  }
   0x1 LB: > { %s866_s19 = sadd.s32 4294967295, %s1045_s18   ;;  %p870_p0 = scmp.ge.s32.totalorder %s1045_s18, 1  ;;  %s1045_s18 = sphi %s1078_s18, %s15_s18  }
   0x2   : > { %p188_p1 = scmp.lt.s32.totalorder %s1045_s18, 4 }
   0x4   : > { %p189_p2 = pnand %p870_p0, %p188_p1 }
   0x5   : > { %v991_v0 = vld [vmem:[%s1292_s1 + $0x4] ss:$8 sps:$4 sm:$0xff] (!%p189_p2)   ;;  %s871_s22 = sshll.u32 (!%p189_p2), %s866_s19, 4  ;;  %v993_v1 = vld [vmem:[%s1292_s1] ss:$8 sps:$4 sm:$0xff] (!%p189_p2)   ;;  %v1047_v2 = vmov (!%p189_p2), 0   ;;  %v263_v41 = vlaneseq (!%p189_p2) }
   0x6   : > { %192 = sbr.rel (%p189_p2) target bundleno = 536 (0x218), region = 40  ;;  %433 = vmatprep.mubr.bf16.mxu0 (!%p189_p2), %v1047_v2  ;;  %p217_p3 = scmp.lt.s32.totalorder (!%p189_p2), %s871_s22, 47  ;;  %401 = vmatprep.subr.bf16.mxu0 (!%p189_p2), %v991_v0  ;;  %v994_v3 = vld [vmem:[%s1292_s1 + $0x14] ss:$8 sps:$4 sm:$0xff] (!%p189_p2)   ;;  %v996_v4 = vld [vmem:[%s1292_s1 + $0x10] ss:$8 sps:$4 sm:$0xff] (!%p189_p2)  }
   0x7   : > { %402 = vmatpush1.bf16.msra.mxu0 (!%p189_p2), %v993_v1  ;;  %v997_v5 = vld [vmem:[%s1292_s1 + $0x24] ss:$8 sps:$4 sm:$0xff] (!%p189_p2)   ;;  %v999_v6 = vld [vmem:[%s1292_s1 + $0x20] ss:$8 sps:$4 sm:$0xff] (!%p189_p2)   ;;  %v1000_v7 = vld [vmem:[%s1292_s1 + $0x34] ss:$8 sps:$4 sm:$0xff] (!%p189_p2)  }
   0x8   : > { %403 = vmatprep.subr.bf16.mxu0 (!%p189_p2), %v994_v3  ;;  %v1002_v8 = vld [vmem:[%s1292_s1 + $0x30] ss:$8 sps:$4 sm:$0xff] (!%p189_p2)   ;;  %v1003_v9 = vld [vmem:[%s1292_s1 + $0x44] ss:$8 sps:$4 sm:$0xff] (!%p189_p2)   ;;  %v1005_v10 = vld [vmem:[%s1292_s1 + $0x40] ss:$8 sps:$4 sm:$0xff] (!%p189_p2)  }
   0x9   : > { %v1006_v11 = vld [vmem:[%s1292_s1 + $0x54] ss:$8 sps:$4 sm:$0xff] (!%p189_p2)   ;;  %v1008_v12 = vld [vmem:[%s1292_s1 + $0x50] ss:$8 sps:$4 sm:$0xff] (!%p189_p2)   ;;  %v1009_v13 = vld [vmem:[%s1292_s1 + $0x64] ss:$8 sps:$4 sm:$0xff] (!%p189_p2)  }
   0xa   : > { %v1023_v14 = vld [vmem:[%s1294_s3 + $0x40] sm:$0xff] (!%p189_p2)   ;;  %v1025_v17 = vld [vmem:[%s1294_s3 + $0x48] sm:$0xff] (!%p189_p2)   ;;  %v1027_v19 = vld [vmem:[%s1294_s3 + $0x50] sm:$0xff] (!%p189_p2)   ;;  %v264_v42 = vshrl.u32 (!%p189_p2), %v263_v41, 7 }
   0xb   : > { %404 = vmatpush1.bf16.msra.mxu0 (!%p189_p2), %v996_v4  ;;  %v1024_v15 = vld [vmem:[%s1294_s3] sm:$0xff] (!%p189_p2)   ;;  %918 = vmatprep.subr.bf16.mxu1 (!%p189_p2), %v1023_v14  ;;  %v1026_v18 = vld [vmem:[%s1294_s3 + $0x8] sm:$0xff] (!%p189_p2)   ;;  %v1012_v20 = vld [vmem:[%s1292_s1 + $0x74] ss:$8 sps:$4 sm:$0xff] (!%p189_p2)  }
   0xc   : > { %405 = vmatprep.subr.bf16.mxu0 (!%p189_p2), %v997_v5  ;;  %v1011_v16 = vld [vmem:[%s1292_s1 + $0x60] ss:$8 sps:$4 sm:$0xff] (!%p189_p2)   ;;  %919 = vmatpush3.bf16.msra.mxu1 (!%p189_p2), %v1024_v15  ;;  %v1014_v21 = vld [vmem:[%s1292_s1 + $0x70] ss:$8 sps:$4 sm:$0xff] (!%p189_p2)   ;;  %v265_v43 = vsub.s32 (!%p189_p2), 0, %v264_v42  ;;  %v269_v45 = vsub.s32 (!%p189_p2), 1, %v264_v42 }
   0xd   : > { %s1298_s22 = smov (!%p217_p3, %s871_s22), 47  ;;  %920 = vmatprep.subr.bf16.mxu1 %v1025_v17  ;;  %v1028_v22 = vld [vmem:[%s1294_s3 + $0x10] sm:$0xff]   ;;  %v1029_v23 = vld [vmem:[%s1294_s3 + $0x58] sm:$0xff]   ;;  %v1031_v26 = vld [vmem:[%s1294_s3 + $0x60] sm:$0xff]  }
   0xe   : > { %s872_s6 = sshll.u32 %s1298_s22, 2  ;;  %v1030_v25 = vld [vmem:[%s1294_s3 + $0x18] sm:$0xff]   ;;  %v1032_v27 = vld [vmem:[%s1294_s3 + $0x20] sm:$0xff]   ;;  %v1033_v28 = vld [vmem:[%s1294_s3 + $0x68] sm:$0xff]   ;;  %s874_s23 = sshll.u32 %s1298_s22, 3 }
   0xf   : > { %s1114_s13 = scalar_lea.vmem %s1291_s0, %s872_s6  ;;  %406 = vmatpush1.bf16.msra.mxu0 %v999_v6  ;;  %v1034_v36 = vld [vmem:[%s1294_s3 + $0x28] sm:$0xff]   ;;  %v1035_v37 = vld [vmem:[%s1294_s3 + $0x70] sm:$0xff]   ;;  %v1037_v39 = vld [vmem:[%s1294_s3 + $0x78] sm:$0xff]   ;;  %s1254_s28 = scalar_lea.vmem %s1296_s5, %s874_s23 }
  0x10   : > { %407 = vmatprep.subr.bf16.mxu0 %v1000_v7  ;;  %921 = vmatpush3.bf16.msra.mxu1 %v1026_v18  ;;  %v1015_v24 = vld [vmem:[%s1114_s13] sm:$0xff]   ;;  %v1016_v29 = vld [vmem:[%s1114_s13 + $0x8] sm:$0xff]   ;;  %v1017_v30 = vld [vmem:[%s1114_s13 + $0x10] sm:$0xff]  }
  0x11   : > { %922 = vmatprep.subr.bf16.mxu1 %v1027_v19  ;;  %v1018_v31 = vld [vmem:[%s1114_s13 + $0x18] sm:$0xff]   ;;  %v1019_v32 = vld [vmem:[%s1114_s13 + $0x20] sm:$0xff]   ;;  %v1020_v33 = vld [vmem:[%s1114_s13 + $0x28] sm:$0xff]  }
  0x12   : > { %v1021_v34 = vld [vmem:[%s1114_s13 + $0x30] sm:$0xff]   ;;  %v1022_v35 = vld [vmem:[%s1114_s13 + $0x38] sm:$0xff]   ;;  %v261_v44 = vld [vmem:[%s1293_s2] sm:$0x3] }
  0x13   : > { %408 = vmatpush1.bf16.msra.mxu0 %v1002_v8  ;;  %v1036_v38 = vld [vmem:[%s1294_s3 + $0x30] sm:$0xff]   ;;  %v1038_v40 = vld [vmem:[%s1294_s3 + $0x38] sm:$0xff]   ;;  %v1209_v46 = vrot.slane %v261_v44, %v265_v43  ;;  %v1211_v47 = vrot.slane %v261_v44, %v269_v45 }
  0x14   : > { %409 = vmatprep.subr.bf16.mxu0 %v1003_v9  ;;  %923 = vmatpush3.bf16.msra.mxu1 %v1028_v22 }
  0x15   : > { %924 = vmatprep.subr.bf16.mxu1 %v1029_v23 }
  0x17   : > { %410 = vmatpush1.bf16.msra.mxu0 %v1005_v10 }
  0x18   : > { %411 = vmatprep.subr.bf16.mxu0 %v1006_v11  ;;  %925 = vmatpush3.bf16.msra.mxu1 %v1030_v25 }
  0x19   : > { %926 = vmatprep.subr.bf16.mxu1 %v1031_v26 }
  0x1b   : > { %412 = vmatpush1.bf16.msra.mxu0 %v1008_v12 }
  0x1c   : > { %413 = vmatprep.subr.bf16.mxu0 %v1009_v13  ;;  %927 = vmatpush3.bf16.msra.mxu1 %v1032_v27 }
  0x1d   : > { %928 = vmatprep.subr.bf16.mxu1 %v1033_v28 }
  0x1f   : > { %414 = vmatpush1.bf16.msra.mxu0 %v1011_v16 }
  0x20   : > { %415 = vmatprep.subr.bf16.mxu0 %v1012_v20  ;;  %929 = vmatpush3.bf16.msra.mxu1 %v1034_v36 }
  0x21   : > { %930 = vmatprep.subr.bf16.mxu1 %v1035_v37 }
  0x23   : > { %416 = vmatpush1.bf16.msra.mxu0 %v1014_v21 }
  0x24   : > { %931 = vmatpush3.bf16.msra.mxu1 %v1036_v38 }
  0x25   : > { %932 = vmatprep.subr.bf16.mxu1 %v1037_v39 }
  0x26   : > { %434 = vmatmul.mubr.bf16.vlgmr.msra.gmra.mrb[0].mxu0 %v1015_v24 }
  0x27   : > { %443 = vmatprep.mubr.bf16.mxu0 %v1047_v2 }
  0x28   : > { %933 = vmatpush3.bf16.msra.mxu1 %v1038_v40 }
  0x2e   : > { %444 = vmatmul.mubr.bf16.gmra.mrb[4].mxu0 %v1016_v29 }
  0x2f   : > { %453 = vmatprep.mubr.bf16.mxu0 %v1047_v2 }
  0x36   : > { %454 = vmatmul.mubr.bf16.gmra.mrb[8].mxu0 %v1017_v30 }
  0x37   : > { %463 = vmatprep.mubr.bf16.mxu0 %v1047_v2 }
  0x3e   : > { %464 = vmatmul.mubr.bf16.gmra.mrb[12].mxu0 %v1018_v31 }
  0x3f   : > { %473 = vmatprep.mubr.bf16.mxu0 %v1047_v2 }
  0x46   : > { %474 = vmatmul.mubr.bf16.gmra.mrb[16].mxu0 %v1019_v32 }
  0x47   : > { %483 = vmatprep.mubr.bf16.mxu0 %v1047_v2 }
  0x4e   : > { %484 = vmatmul.mubr.bf16.gmra.mrb[20].mxu0 %v1020_v33 }
  0x4f   : > { %493 = vmatprep.mubr.bf16.mxu0 %v1047_v2 }
  0x56   : > { %494 = vmatmul.mubr.bf16.gmra.mrb[24].mxu0 %v1021_v34 }
  0x57   : > { %503 = vmatprep.mubr.bf16.mxu0 %v1047_v2 }
  0x5e   : > { %504 = vmatmul.mubr.bf16.gmra.mrb[28].mxu0 %v1022_v35 }
  0xf9   : > { %v435_v48 = vpop.f32.mrb[0].mxu0 }
  0xfa   : > { %v436_v49 = vadd.f32 %v435_v48, %v1209_v46  ;;  %v437_v50 = vpop.f32.mrb[1].mxu0 }
  0xfb   : > { %v438_v51 = vadd.f32 %v437_v50, %v1211_v47  ;;  %v439_v52 = vpop.f32.mrb[2].mxu0 }
  0xfc   : > { %v440_v53 = vadd.f32 %v439_v52, %v1209_v46  ;;  %v441_v54 = vpop.f32.mrb[3].mxu0  ;;  %v514_v56 = vmax.f32 %v436_v49, 0.0 }
  0xfd   : > { %v442_v55 = vadd.f32 %v441_v54, %v1211_v47  ;;  %v515_v58 = vmax.f32 %v438_v51, 0.0 }
  0xfe   : > { %v516_v57 = vmax.f32 %v440_v53, 0.0 }
  0xff   : > { %v517_v59 = vmax.f32 %v442_v55, 0.0 }
 0x100   : > { %v546_v60 = vpack.c.bf16 %v516_v57, %v514_v56 }
 0x101   : > { %v445_v61 = vpop.f32.mrb[4].mxu0  ;;  %v547_v62 = vpack.c.bf16 %v517_v59, %v515_v58 }
 0x102   : > { %v446_v63 = vadd.f32 %v445_v61, %v1209_v46  ;;  %v447_v0 = vpop.f32.mrb[5].mxu0 }
 0x103   : > { %v448_v1 = vadd.f32 %v447_v0, %v1211_v47  ;;  %v449_v2 = vpop.f32.mrb[6].mxu0  ;;  %729 = vmatprep.mubr.bf16.mxu1 %v547_v62 }
 0x104   : > { %v450_v3 = vadd.f32 %v449_v2, %v1209_v46  ;;  %v451_v4 = vpop.f32.mrb[7].mxu0  ;;  %730 = vmatmul.mubr.bf16.vlgmr.msra.gmra.mrb[0].mxu1 %v546_v60  ;;  %v518_v6 = vmax.f32 %v446_v63, 0.0 }
 0x105   : > { %v452_v5 = vadd.f32 %v451_v4, %v1211_v47  ;;  %v519_v8 = vmax.f32 %v448_v1, 0.0 }
 0x106   : > { %v520_v7 = vmax.f32 %v450_v3, 0.0 }
 0x107   : > { %v521_v9 = vmax.f32 %v452_v5, 0.0 }
 0x108   : > { %v548_v10 = vpack.c.bf16 %v520_v7, %v518_v6 }
 0x109   : > { %v549_v11 = vpack.c.bf16 %v521_v9, %v519_v8  ;;  %v455_v12 = vpop.f32.mrb[8].mxu0 }
 0x10a   : > { %v456_v13 = vadd.f32 %v455_v12, %v1209_v46  ;;  %v457_v14 = vpop.f32.mrb[9].mxu0 }
 0x10b   : > { %v458_v15 = vadd.f32 %v457_v14, %v1211_v47  ;;  %v459_v16 = vpop.f32.mrb[10].mxu0  ;;  %737 = vmatprep.mubr.bf16.mxu1 %v549_v11 }
 0x10c   : > { %v460_v17 = vadd.f32 %v459_v16, %v1209_v46  ;;  %v461_v18 = vpop.f32.mrb[11].mxu0  ;;  %738 = vmatmul.mubr.bf16.gmra.mrb[4].mxu1 %v548_v10  ;;  %v522_v20 = vmax.f32 %v456_v13, 0.0 }
 0x10d   : > { %v462_v19 = vadd.f32 %v461_v18, %v1211_v47  ;;  %v523_v22 = vmax.f32 %v458_v15, 0.0 }
 0x10e   : > { %v524_v21 = vmax.f32 %v460_v17, 0.0 }
 0x10f   : > { %v525_v23 = vmax.f32 %v462_v19, 0.0 }
 0x110   : > { %v550_v24 = vpack.c.bf16 %v524_v21, %v522_v20 }
 0x111   : > { %v551_v25 = vpack.c.bf16 %v525_v23, %v523_v22  ;;  %v465_v26 = vpop.f32.mrb[12].mxu0 }
 0x112   : > { %v466_v27 = vadd.f32 %v465_v26, %v1209_v46  ;;  %v467_v28 = vpop.f32.mrb[13].mxu0 }
 0x113   : > { %v468_v29 = vadd.f32 %v467_v28, %v1211_v47  ;;  %v469_v30 = vpop.f32.mrb[14].mxu0  ;;  %745 = vmatprep.mubr.bf16.mxu1 %v551_v25 }
 0x114   : > { %v470_v31 = vadd.f32 %v469_v30, %v1209_v46  ;;  %v471_v32 = vpop.f32.mrb[15].mxu0  ;;  %746 = vmatmul.mubr.bf16.gmra.mrb[8].mxu1 %v550_v24  ;;  %v526_v34 = vmax.f32 %v466_v27, 0.0 }
 0x115   : > { %v472_v33 = vadd.f32 %v471_v32, %v1211_v47  ;;  %v527_v36 = vmax.f32 %v468_v29, 0.0 }
 0x116   : > { %v528_v35 = vmax.f32 %v470_v31, 0.0 }
 0x117   : > { %v529_v37 = vmax.f32 %v472_v33, 0.0 }
 0x118   : > { %v552_v38 = vpack.c.bf16 %v528_v35, %v526_v34  ;;  %v1249_v35 = vld [vmem:[%s1295_s4] ss:$0 sm:$0xff] }
 0x119   : > { %v553_v39 = vpack.c.bf16 %v529_v37, %v527_v36  ;;  %v475_v40 = vpop.f32.mrb[16].mxu0 }
 0x11a   : > { %v476_v41 = vadd.f32 %v475_v40, %v1209_v46  ;;  %v477_v42 = vpop.f32.mrb[17].mxu0 }
 0x11b   : > { %v478_v43 = vadd.f32 %v477_v42, %v1211_v47  ;;  %v479_v44 = vpop.f32.mrb[18].mxu0  ;;  %753 = vmatprep.mubr.bf16.mxu1 %v553_v39 }
 0x11c   : > { %v480_v45 = vadd.f32 %v479_v44, %v1209_v46  ;;  %v481_v48 = vpop.f32.mrb[19].mxu0  ;;  %754 = vmatmul.mubr.bf16.gmra.mrb[12].mxu1 %v552_v38  ;;  %v530_v50 = vmax.f32 %v476_v41, 0.0 }
 0x11d   : > { %v482_v49 = vadd.f32 %v481_v48, %v1211_v47  ;;  %v531_v52 = vmax.f32 %v478_v43, 0.0 }
 0x11e   : > { %v532_v51 = vmax.f32 %v480_v45, 0.0 }
 0x11f   : > { %v533_v53 = vmax.f32 %v482_v49, 0.0 }
 0x120   : > { %v554_v54 = vpack.c.bf16 %v532_v51, %v530_v50 }
 0x121   : > { %v555_v55 = vpack.c.bf16 %v533_v53, %v531_v52  ;;  %v485_v56 = vpop.f32.mrb[20].mxu0 }
 0x122   : > { %v486_v57 = vadd.f32 %v485_v56, %v1209_v46  ;;  %v487_v58 = vpop.f32.mrb[21].mxu0 }
 0x123   : > { %v488_v59 = vadd.f32 %v487_v58, %v1211_v47  ;;  %v489_v60 = vpop.f32.mrb[22].mxu0  ;;  %761 = vmatprep.mubr.bf16.mxu1 %v555_v55 }
 0x124   : > { %v490_v61 = vadd.f32 %v489_v60, %v1209_v46  ;;  %v491_v62 = vpop.f32.mrb[23].mxu0  ;;  %762 = vmatmul.mubr.bf16.gmra.mrb[16].mxu1 %v554_v54  ;;  %v534_v0 = vmax.f32 %v486_v57, 0.0 }
 0x125   : > { %v492_v63 = vadd.f32 %v491_v62, %v1211_v47  ;;  %v535_v2 = vmax.f32 %v488_v59, 0.0 }
 0x126   : > { %v536_v1 = vmax.f32 %v490_v61, 0.0 }
 0x127   : > { %v537_v3 = vmax.f32 %v492_v63, 0.0 }
 0x128   : > { %v556_v4 = vpack.c.bf16 %v536_v1, %v534_v0 }
 0x129   : > { %v557_v5 = vpack.c.bf16 %v537_v3, %v535_v2  ;;  %v495_v6 = vpop.f32.mrb[24].mxu0 }
 0x12a   : > { %v496_v7 = vadd.f32 %v495_v6, %v1209_v46  ;;  %v497_v8 = vpop.f32.mrb[25].mxu0 }
 0x12b   : > { %v498_v9 = vadd.f32 %v497_v8, %v1211_v47  ;;  %v499_v10 = vpop.f32.mrb[26].mxu0  ;;  %769 = vmatprep.mubr.bf16.mxu1 %v557_v5 }
 0x12c   : > { %v500_v11 = vadd.f32 %v499_v10, %v1209_v46  ;;  %v501_v12 = vpop.f32.mrb[27].mxu0  ;;  %770 = vmatmul.mubr.bf16.gmra.mrb[20].mxu1 %v556_v4  ;;  %v538_v14 = vmax.f32 %v496_v7, 0.0 }
 0x12d   : > { %v502_v13 = vadd.f32 %v501_v12, %v1211_v47  ;;  %v539_v16 = vmax.f32 %v498_v9, 0.0 }
 0x12e   : > { %v540_v15 = vmax.f32 %v500_v11, 0.0 }
 0x12f   : > { %v541_v17 = vmax.f32 %v502_v13, 0.0 }
 0x130   : > { %v558_v18 = vpack.c.bf16 %v540_v15, %v538_v14 }
 0x131   : > { %v559_v19 = vpack.c.bf16 %v541_v17, %v539_v16  ;;  %v505_v20 = vpop.f32.mrb[28].mxu0 }
 0x132   : > { %v506_v21 = vadd.f32 %v505_v20, %v1209_v46  ;;  %v507_v22 = vpop.f32.mrb[29].mxu0 }
 0x133   : > { %v508_v23 = vadd.f32 %v507_v22, %v1211_v47  ;;  %v509_v24 = vpop.f32.mrb[30].mxu0  ;;  %777 = vmatprep.mubr.bf16.mxu1 %v559_v19 }
 0x134   : > { %v510_v25 = vadd.f32 %v509_v24, %v1209_v46  ;;  %v511_v26 = vpop.f32.mrb[31].mxu0  ;;  %778 = vmatmul.mubr.bf16.gmra.mrb[24].mxu1 %v558_v18  ;;  %v542_v28 = vmax.f32 %v506_v21, 0.0 }
 0x135   : > { %v512_v27 = vadd.f32 %v511_v26, %v1211_v47  ;;  %v543_v30 = vmax.f32 %v508_v23, 0.0 }
 0x136   : > { %v544_v29 = vmax.f32 %v510_v25, 0.0 }
 0x137   : > { %v545_v31 = vmax.f32 %v512_v27, 0.0 }
 0x138   : > { %v560_v32 = vpack.c.bf16 %v544_v29, %v542_v28 }
 0x139   : > { %v561_v33 = vpack.c.bf16 %v545_v31, %v543_v30 }
 0x13b   : > { %785 = vmatprep.mubr.bf16.mxu1 %v561_v33 }
 0x13c   : > { %786 = vmatmul.mubr.bf16.gmra.mrb[28].mxu1 %v560_v32 }
 0x1d7   : > { %v934_v34 = vpop.f32.mrb[0].mxu1 }
 0x1d8   : > { %v935_v46 = vpop.f32.mrb[1].mxu1 }
 0x1d9   : > { %v936_v36 = vadd.f32 %v935_v46, %v934_v34  ;;  %v937_v37 = vpop.f32.mrb[2].mxu1 }
 0x1da   : > { %v938_v47 = vpop.f32.mrb[3].mxu1 }
 0x1db   : > { %v732_v38 = vadd.f32 %v936_v36, %v1249_v35  ;;  %v939_v39 = vadd.f32 %v938_v47, %v937_v37 }
 0x1dd   : > { %794 = vst [vmem:[%s1254_s28] sm:$0xff] %v732_v38  ;;  %v735_v40 = vadd.f32 %v939_v39, %v1249_v35 }
 0x1df   : > { %795 = vst [vmem:[%s1254_s28 + $0x8] sm:$0xff] %v735_v40  ;;  %v940_v41 = vpop.f32.mrb[4].mxu1 }
 0x1e0   : > { %v941_v42 = vpop.f32.mrb[5].mxu1 }
 0x1e1   : > { %v942_v43 = vadd.f32 %v941_v42, %v940_v41  ;;  %v943_v44 = vpop.f32.mrb[6].mxu1 }
 0x1e2   : > { %v944_v45 = vpop.f32.mrb[7].mxu1 }
 0x1e3   : > { %v740_v48 = vadd.f32 %v942_v43, %v1249_v35  ;;  %v945_v49 = vadd.f32 %v944_v45, %v943_v44 }
 0x1e5   : > { %796 = vst [vmem:[%s1254_s28 + $0x10] sm:$0xff] %v740_v48  ;;  %v743_v50 = vadd.f32 %v945_v49, %v1249_v35 }
 0x1e7   : > { %797 = vst [vmem:[%s1254_s28 + $0x18] sm:$0xff] %v743_v50  ;;  %v946_v51 = vpop.f32.mrb[8].mxu1 }
 0x1e8   : > { %v947_v52 = vpop.f32.mrb[9].mxu1 }
 0x1e9   : > { %v948_v53 = vadd.f32 %v947_v52, %v946_v51  ;;  %v949_v54 = vpop.f32.mrb[10].mxu1 }
 0x1ea   : > { %v950_v55 = vpop.f32.mrb[11].mxu1 }
 0x1eb   : > { %v748_v56 = vadd.f32 %v948_v53, %v1249_v35  ;;  %v951_v57 = vadd.f32 %v950_v55, %v949_v54 }
 0x1ed   : > { %798 = vst [vmem:[%s1254_s28 + $0x20] sm:$0xff] %v748_v56  ;;  %v751_v58 = vadd.f32 %v951_v57, %v1249_v35 }
 0x1ef   : > { %799 = vst [vmem:[%s1254_s28 + $0x28] sm:$0xff] %v751_v58  ;;  %v952_v59 = vpop.f32.mrb[12].mxu1 }
 0x1f0   : > { %v953_v60 = vpop.f32.mrb[13].mxu1 }
 0x1f1   : > { %v954_v61 = vadd.f32 %v953_v60, %v952_v59  ;;  %v955_v62 = vpop.f32.mrb[14].mxu1 }
 0x1f2   : > { %v956_v63 = vpop.f32.mrb[15].mxu1 }
 0x1f3   : > { %v756_v0 = vadd.f32 %v954_v61, %v1249_v35  ;;  %v957_v1 = vadd.f32 %v956_v63, %v955_v62 }
 0x1f5   : > { %800 = vst [vmem:[%s1254_s28 + $0x30] sm:$0xff] %v756_v0  ;;  %v759_v2 = vadd.f32 %v957_v1, %v1249_v35 }
 0x1f7   : > { %801 = vst [vmem:[%s1254_s28 + $0x38] sm:$0xff] %v759_v2  ;;  %v958_v3 = vpop.f32.mrb[16].mxu1 }
 0x1f8   : > { %v959_v4 = vpop.f32.mrb[17].mxu1 }
 0x1f9   : > { %v960_v5 = vadd.f32 %v959_v4, %v958_v3  ;;  %v961_v6 = vpop.f32.mrb[18].mxu1 }
 0x1fa   : > { %v962_v7 = vpop.f32.mrb[19].mxu1 }
 0x1fb   : > { %v764_v8 = vadd.f32 %v960_v5, %v1249_v35  ;;  %v963_v9 = vadd.f32 %v962_v7, %v961_v6 }
 0x1fd   : > { %802 = vst [vmem:[%s1254_s28 + $0x40] sm:$0xff] %v764_v8  ;;  %v767_v10 = vadd.f32 %v963_v9, %v1249_v35 }
 0x1ff   : > { %803 = vst [vmem:[%s1254_s28 + $0x48] sm:$0xff] %v767_v10  ;;  %v964_v11 = vpop.f32.mrb[20].mxu1 }
 0x200   : > { %v965_v12 = vpop.f32.mrb[21].mxu1 }
 0x201   : > { %v966_v13 = vadd.f32 %v965_v12, %v964_v11  ;;  %v967_v14 = vpop.f32.mrb[22].mxu1 }
 0x202   : > { %v968_v15 = vpop.f32.mrb[23].mxu1 }
 0x203   : > { %v772_v16 = vadd.f32 %v966_v13, %v1249_v35  ;;  %v969_v17 = vadd.f32 %v968_v15, %v967_v14 }
 0x205   : > { %804 = vst [vmem:[%s1254_s28 + $0x50] sm:$0xff] %v772_v16  ;;  %v775_v18 = vadd.f32 %v969_v17, %v1249_v35 }
 0x207   : > { %805 = vst [vmem:[%s1254_s28 + $0x58] sm:$0xff] %v775_v18  ;;  %v970_v19 = vpop.f32.mrb[24].mxu1 }
 0x208   : > { %v971_v20 = vpop.f32.mrb[25].mxu1 }
 0x209   : > { %v972_v21 = vadd.f32 %v971_v20, %v970_v19  ;;  %v973_v22 = vpop.f32.mrb[26].mxu1 }
 0x20a   : > { %v974_v23 = vpop.f32.mrb[27].mxu1 }
 0x20b   : > { %v780_v24 = vadd.f32 %v972_v21, %v1249_v35  ;;  %v975_v25 = vadd.f32 %v974_v23, %v973_v22 }
 0x20d   : > { %806 = vst [vmem:[%s1254_s28 + $0x60] sm:$0xff] %v780_v24  ;;  %v783_v26 = vadd.f32 %v975_v25, %v1249_v35 }
 0x20f   : > { %807 = vst [vmem:[%s1254_s28 + $0x68] sm:$0xff] %v783_v26  ;;  %v976_v27 = vpop.f32.mrb[28].mxu1 }
 0x210   : > { %v977_v28 = vpop.f32.mrb[29].mxu1 }
 0x211   : > { %v978_v29 = vadd.f32 %v977_v28, %v976_v27  ;;  %v979_v30 = vpop.f32.mrb[30].mxu1 }
 0x212   : > { %v980_v31 = vpop.f32.mrb[31].mxu1 }
 0x213   : > { %v788_v32 = vadd.f32 %v978_v29, %v1249_v35  ;;  %v981_v33 = vadd.f32 %v980_v31, %v979_v30 }
 0x215   : > { %808 = vst [vmem:[%s1254_s28 + $0x70] sm:$0xff] %v788_v32  ;;  %v791_v34 = vadd.f32 %v981_v33, %v1249_v35 }
 0x217   : > { %809 = vst [vmem:[%s1254_s28 + $0x78] sm:$0xff] %v791_v34 }
 0x218 PF: > { %s15_s18 = sadd.s32 1, %s1045_s18  }
 0x219   : > { %p12_p4 = scmp.ge.s32.totalorder %s15_s18, 5  }
 0x21b   :  { %14 = sbr.rel (!%p12_p4) target bundleno = 1 (0x1), region = 70 }

</bundles_post_ra>
